<compile_context>
chip_gen: v6e
topology: v6e:2x2x1
jax: 0.10.0
libtpu: 0.0.40
codegen_flags: <defaults>
</compile_context>

<pallas_src>
import functools

import jax
import jax.numpy as jnp
from jax.experimental import pallas as pl
from jax.experimental.pallas import tpu as pltpu


def _round_up(x, m):
    return ((x + m - 1) // m) * m


def _device_kind():
    try:
        return jax.devices()[0].device_kind.lower()
    except Exception:
        return ""


def _gat_tile_kernel(flags_ref, nsrc_ref, ndst_ref, h_ref, adj_ref, out_ref,
                     *, alpha, ones_col, bf16_exp, concat):
    i = pl.program_id(0)
    j = pl.program_id(1)
    nj = pl.num_programs(1)

    @pl.when(j == 0)
    def _():
        out_ref[...] = jnp.zeros_like(out_ref)

    # ---- block-sparsity skip: all-zero adjacency tiles do no work at all ----
    @pl.when(flags_ref[i * nj + j] != 0)
    def _():
        # -leakyrelu(score) from pre-negated score pieces with a single min/max:
        #   neg = -(s_src + s_dst);  -lrelu = min(neg, alpha*neg)  for 0 < alpha <= 1.
        neg = nsrc_ref[...] + ndst_ref[...]                     # (TM, TN) f32
        if alpha <= 1.0:
            neg_lrelu = jnp.minimum(neg, alpha * neg)
        else:
            neg_lrelu = jnp.maximum(neg, alpha * neg)
        mask = adj_ref[...] != 0                                # int8 adjacency
        # Select BEFORE the exp: non-edges get a huge negative argument so exp
        # underflows to exactly 0 (no inf*0 hazard, no second select pass).
        arg = jnp.where(mask, neg_lrelu, jnp.float32(-1e9))
        if bf16_exp:
            e = jnp.exp(arg.astype(jnp.bfloat16))               # bf16 EUP (v6e/v7x)
        else:
            e = jnp.exp(arg).astype(jnp.bfloat16)               # f32 EUP (v5e)
        # e @ [h | 1]: the ones column of h carries the row-sum through the MXU.
        # Accumulate straight into the resident output block (index const across j).
        out_ref[...] += jnp.dot(e, h_ref[...],
                                preferred_element_type=jnp.float32)

    @pl.when(j == nj - 1)
    def _():
        acc = out_ref[...]                                      # (TM, F_pad) f32
        rowsum = acc[:, ones_col:ones_col + 1]                  # (TM, 1) e-row-sum
        inv = pl.reciprocal(rowsum + 1e-8, approx=True)         # EUP
        hp = acc * inv
        if concat:
            hp = jnp.where(hp > 0, hp, jnp.exp(hp) - 1.0)       # F.elu
        out_ref[...] = hp.astype(out_ref.dtype)


def sp_graph_attention_layer(x, adj, W, a, *, alpha=0.2, concat=True,
                             tm=512, tn=512):
    """Pallas forward pass of SpGraphAttentionLayer (eval mode)."""
    N, in_features = x.shape
    out_features = W.shape[1]
    assert adj.shape == (N, N)
    assert a.shape == (1, 2 * out_features)

    kind = _device_kind()
    bf16_exp = ("v6" in kind) or ("v7" in kind)   # v5e & older: keep f32 exp

    # ---- hoisted tiny projections (1-wide outputs waste the MXU in-kernel) ----
    h = jnp.dot(x.astype(jnp.float32), W.astype(jnp.float32))   # (N, F_out) f32
    a32 = a.astype(jnp.float32)
    # pass NEGATED score pieces so the kernel does -leakyrelu with a single min.
    neg_s_src = -jnp.dot(h, a32[:, :out_features].T)            # (N, 1)
    neg_s_dst = -jnp.dot(h, a32[:, out_features:].T).T          # (1, N)

    # ---- tile sizing ----
    tm = min(tm, _round_up(N, 8))            # row-tile: multiple of 8 sublanes
    if ("v7" in kind) and N >= 64:
        # keep >= 2 row tiles so the parallel i axis can shard across the 2 TCs.
        tm = min(tm, _round_up((N + 1) // 2, 32))
    tn = min(tn, _round_up(N, 128))          # neighbor-tile: multiple of 128 lanes
    n_rows = _round_up(N, tm)
    n_cols = _round_up(N, tn)
    f_pad = _round_up(out_features + 1, 128)  # +1 reserves room for the ones column
    ones_col = out_features

    # ---- padded operands ----
    neg_s_src_p = jnp.zeros((n_rows, 1), jnp.float32).at[:N, :].set(neg_s_src)
    neg_s_dst_p = jnp.zeros((1, n_cols), jnp.float32).at[:, :N].set(neg_s_dst)
    h_p = (jnp.zeros((n_cols, f_pad), jnp.bfloat16)
           .at[:N, :out_features].set(h.astype(jnp.bfloat16))
           .at[:N, ones_col].set(1.0))                          # ones column -> rowsum
    # adj only used as a 1-bit mask -> ship it as int8 (padded rows/cols = no edge).
    adj_p = jnp.zeros((n_rows, n_cols), jnp.int8).at[:N, :N].set(
        (adj != 0).astype(jnp.int8))

    gi, gj = n_rows // tm, n_cols // tn
    # per-tile "has any edge" flags, flattened 1-D for SMEM prefetch.
    flags = jnp.any(adj_p.reshape(gi, tm, gj, tn) != 0,
                    axis=(1, 3)).astype(jnp.int32).reshape(-1)

    kernel = functools.partial(_gat_tile_kernel, alpha=float(alpha),
                               ones_col=ones_col, bf16_exp=bf16_exp,
                               concat=bool(concat))

    # VMEM budget: double-buffered inputs + resident output block (+ headroom).
    vmem_bytes = (2 * tm * 4 + 2 * tn * 4 + 2 * tn * f_pad * 2
                  + 2 * tm * tn + 2 * tm * f_pad * 4)
    vmem_limit = int(min(max(2 * vmem_bytes + (4 << 20), 16 << 20), 64 << 20))

    cost = pl.CostEstimate(
        flops=2 * n_rows * n_cols * f_pad + 8 * n_rows * n_cols,
        transcendentals=n_rows * n_cols,
        bytes_accessed=(n_rows * n_cols                # adj int8
                        + gi * n_cols * f_pad * 2      # h re-fetched per row tile
                        + n_rows * f_pad * 4           # output
                        + (n_rows + n_cols) * 4))      # score pieces

    out = pl.pallas_call(
        kernel,
        out_shape=jax.ShapeDtypeStruct((n_rows, f_pad), jnp.float32),
        grid_spec=pltpu.PrefetchScalarGridSpec(
            num_scalar_prefetch=1,
            grid=(gi, gj),
            in_specs=[
                pl.BlockSpec((tm, 1), lambda i, j, flags: (i, 0)),       # -s_src
                pl.BlockSpec((1, tn), lambda i, j, flags: (0, j)),       # -s_dst
                pl.BlockSpec((tn, f_pad), lambda i, j, flags: (j, 0)),   # [h | 1] bf16
                pl.BlockSpec((tm, tn), lambda i, j, flags: (i, j)),      # adj int8
            ],
            out_specs=pl.BlockSpec((tm, f_pad), lambda i, j, flags: (i, 0)),
        ),
        compiler_params=pltpu.CompilerParams(
            dimension_semantics=("parallel", "arbitrary"),
            vmem_limit_bytes=vmem_limit,
        ),
        cost_estimate=cost,
    )(flags, neg_s_src_p, neg_s_dst_p, h_p, adj_p)

    # Slice padding away; the reference's `.unsqueeze(0)` happens here, not in-kernel.
    return out[:N, :out_features][None]


def _reference(x, adj, W, a, alpha, concat=True):
    """Pure-JAX replica of the PyTorch forward (eval mode)."""
    F_out = W.shape[1]
    h = x @ W
    s_src = h @ a[:, :F_out].T
    s_dst = h @ a[:, F_out:].T
    scores = s_src + s_dst.T
    lrelu = jnp.where(scores > 0, scores, alpha * scores)
    e = jnp.where(adj != 0, jnp.exp(-lrelu), 0.0)
    rowsum = e.sum(axis=1, keepdims=True) + 1e-8
    hp = (e @ h) / rowsum
    if concat:
        hp = jnp.where(hp > 0, hp, jnp.exp(hp) - 1.0)
    return hp[None]


def _xavier_normal(key, shape, gain):
    fan_in, fan_out = shape[0], shape[1]
    std = gain * jnp.sqrt(2.0 / (fan_in + fan_out))
    return std * jax.random.normal(key, shape, dtype=jnp.float32)


if __name__ == "__main__":
    # Small deterministic setup: N=16 nodes, in_features=8, out_features=16.
    N, in_features, out_features = 16, 8, 16
    alpha = 0.2

    key = jax.random.PRNGKey(0)
    k_x, k_adj, k_w, k_a = jax.random.split(key, 4)

    x = jax.random.normal(k_x, (N, in_features), dtype=jnp.float32)
    # Random sparse-ish adjacency with self loops (values in {0, 1}).
    adj = (jax.random.uniform(k_adj, (N, N)) < 0.3).astype(jnp.float32)
    adj = jnp.maximum(adj, jnp.eye(N, dtype=jnp.float32))

    # Parameter init matching nn.init.xavier_normal_(gain=1.414), deterministic seed.
    W = _xavier_normal(k_w, (in_features, out_features), gain=1.414)
    a = _xavier_normal(k_a, (1, 2 * out_features), gain=1.414)

    out = sp_graph_attention_layer(x, adj, W, a, alpha=alpha, concat=True)
    out = jax.block_until_ready(out)

    assert out.shape == (1, N, out_features)
    assert bool(jnp.all(jnp.isfinite(out)))

    ref = _reference(x, adj, W, a, alpha, concat=True)
    # bf16 exp/aggregation + approx reciprocal -> loose tolerance.
    assert bool(jnp.allclose(out, ref, rtol=5e-2, atol=5e-2)), (
        float(jnp.max(jnp.abs(out - ref))))

    print("KERNEL_OK")
</pallas_src>

<mosaic_0001>
module attributes {stable_mosaic.version = 11 : i64} {
  func.func @_gat_tile_kernel(%arg0: i32, %arg1: i32, %arg2: memref<1xi32, #tpu.memory_space<smem>>, %arg3: memref<16x1xf32, #tpu.memory_space<vmem>>, %arg4: memref<1x128xf32, #tpu.memory_space<vmem>>, %arg5: memref<128x128xbf16, #tpu.memory_space<vmem>>, %arg6: memref<16x128xi8, #tpu.memory_space<vmem>>, %arg7: memref<16x128xf32, #tpu.memory_space<vmem>>) attributes {dimension_semantics = [#tpu.dimension_semantics<parallel>, #tpu.dimension_semantics<arbitrary>], iteration_bounds = array<i64: 1, 1>, scalar_prefetch = 1 : i64, scratch_operands = 0 : i64, tpu.core_type = #tpu.core_type<tc>, window_params = [{transform_indices = @transform_0, window_bounds = array<i64: 16, 1>}, {transform_indices = @transform_1, window_bounds = array<i64: 1, 128>}, {transform_indices = @transform_2, window_bounds = array<i64: 128, 128>}, {transform_indices = @transform_3, window_bounds = array<i64: 16, 128>}, {transform_indices = @transform_4, window_bounds = array<i64: 16, 128>}]} {
    %c0_i32 = arith.constant 0 : i32
    %0 = arith.cmpi eq, %arg1, %c0_i32 : i32
    %1 = arith.extui %0 : i1 to i32
    %c0_i32_0 = arith.constant 0 : i32
    %2 = arith.cmpi ne, %1, %c0_i32_0 : i32
    scf.if %2 {
      %cst = arith.constant 0.000000e+00 : f32
      %13 = vector.broadcast %cst : f32 to vector<16x128xf32>
      %c0 = arith.constant 0 : index
      %c0_5 = arith.constant 0 : index
      %14 = vector.load %arg7[%c0, %c0_5] : memref<16x128xf32, #tpu.memory_space<vmem>>, vector<16x128xf32>
      tpu.vector_store %arg7[%c0, %c0_5], %13 {strides = array<i32>} : memref<16x128xf32, #tpu.memory_space<vmem>>, vector<16x128xf32>,
    } else {
    }
    %c1_i32 = arith.constant 1 : i32
    %3 = arith.muli %arg0, %c1_i32 : i32
    %4 = arith.addi %3, %arg1 : i32
    %5 = arith.index_cast %4 : i32 to index
    %6 = memref.load %arg2[%5] : memref<1xi32, #tpu.memory_space<smem>>
    %c0_i32_1 = arith.constant 0 : i32
    %7 = arith.cmpi ne, %6, %c0_i32_1 : i32
    %8 = arith.extui %7 : i1 to i32
    %c0_i32_2 = arith.constant 0 : i32
    %9 = arith.cmpi ne, %8, %c0_i32_2 : i32
    scf.if %9 {
      %c0 = arith.constant 0 : index
      %c0_5 = arith.constant 0 : index
      %13 = vector.load %arg3[%c0, %c0_5] : memref<16x1xf32, #tpu.memory_space<vmem>>, vector<16x1xf32>
      %c0_6 = arith.constant 0 : index
      %c0_7 = arith.constant 0 : index
      %14 = vector.load %arg4[%c0_6, %c0_7] : memref<1x128xf32, #tpu.memory_space<vmem>>, vector<1x128xf32>
      %15 = vector.broadcast %13 : vector<16x1xf32> to vector<16x128xf32>
      %16 = vector.broadcast %14 : vector<1x128xf32> to vector<16x128xf32>
      %17 = arith.addf %15, %16 : vector<16x128xf32>
      %cst = arith.constant 2.000000e-01 : f32
      %18 = vector.broadcast %cst : f32 to vector<16x128xf32>
      %19 = arith.mulf %18, %17 : vector<16x128xf32>
      %20 = arith.minimumf %17, %19 : vector<16x128xf32>
      %c0_8 = arith.constant 0 : index
      %c0_9 = arith.constant 0 : index
      %21 = vector.load %arg6[%c0_8, %c0_9] : memref<16x128xi8, #tpu.memory_space<vmem>>, vector<16x128xi8>
      %c0_i8 = arith.constant 0 : i8
      %22 = vector.broadcast %c0_i8 : i8 to vector<16x128xi8>
      %23 = arith.cmpi ne, %21, %22 : vector<16x128xi8>
      %cst_10 = arith.constant -1.000000e+09 : f32
      %24 = vector.broadcast %cst_10 : f32 to vector<16x128xf32>
      %25 = arith.select %23, %20, %24 : vector<16x128xi1>, vector<16x128xf32>
      %26 = math.exp %25 : vector<16x128xf32>
      %27 = arith.truncf %26 : vector<16x128xf32> to vector<16x128xbf16>
      %c0_11 = arith.constant 0 : index
      %c0_12 = arith.constant 0 : index
      %28 = vector.load %arg7[%c0_11, %c0_12] : memref<16x128xf32, #tpu.memory_space<vmem>>, vector<16x128xf32>
      %c0_13 = arith.constant 0 : index
      %c0_14 = arith.constant 0 : index
      %29 = vector.load %arg5[%c0_13, %c0_14] : memref<128x128xbf16, #tpu.memory_space<vmem>>, vector<128x128xbf16>
      %cst_15 = arith.constant dense<0.000000e+00> : vector<16x128xf32>
      %30 = tpu.matmul %27, %29, %cst_15 {dimension_numbers = #tpu.dot_dimension_numbers<[1], [0], [0], [1], [0, 0, 1, 1], [], []>} : vector<16x128xbf16>, vector<128x128xbf16>, vector<16x128xf32> -> vector<16x128xf32>
      %31 = arith.addf %28, %30 : vector<16x128xf32>
      %c0_16 = arith.constant 0 : index
      %c0_17 = arith.constant 0 : index
      %32 = vector.load %arg7[%c0_16, %c0_17] : memref<16x128xf32, #tpu.memory_space<vmem>>, vector<16x128xf32>
      tpu.vector_store %arg7[%c0_16, %c0_17], %31 {strides = array<i32>} : memref<16x128xf32, #tpu.memory_space<vmem>>, vector<16x128xf32>,
    } else {
    }
    %c0_i32_3 = arith.constant 0 : i32
    %10 = arith.cmpi eq, %arg1, %c0_i32_3 : i32
    %11 = arith.extui %10 : i1 to i32
    %c0_i32_4 = arith.constant 0 : i32
    %12 = arith.cmpi ne, %11, %c0_i32_4 : i32
    scf.if %12 {
      %c0 = arith.constant 0 : index
      %c0_5 = arith.constant 0 : index
      %13 = vector.load %arg7[%c0, %c0_5] : memref<16x128xf32, #tpu.memory_space<vmem>>, vector<16x128xf32>
      %14 = vector.extract_strided_slice %13 {offsets = [0, 16], sizes = [16, 1], strides = [1, 1]} : vector<16x128xf32> to vector<16x1xf32>
      %cst = arith.constant 9.99999993E-9 : f32
      %15 = vector.broadcast %cst : f32 to vector<16x1xf32>
      %16 = arith.addf %14, %15 : vector<16x1xf32>
      %17 = tpu.reciprocal %16 {approx = true} : vector<16x1xf32> -> vector<16x1xf32>
      %18 = vector.broadcast %17 : vector<16x1xf32> to vector<16x128xf32>
      %19 = arith.mulf %13, %18 : vector<16x128xf32>
      %cst_6 = arith.constant 0.000000e+00 : f32
      %20 = vector.broadcast %cst_6 : f32 to vector<16x128xf32>
      %21 = arith.cmpf ogt, %19, %20 : vector<16x128xf32>
      %22 = math.exp %19 : vector<16x128xf32>
      %cst_7 = arith.constant 1.000000e+00 : f32
      %23 = vector.broadcast %cst_7 : f32 to vector<16x128xf32>
      %24 = arith.subf %22, %23 : vector<16x128xf32>
      %25 = arith.select %21, %19, %24 : vector<16x128xi1>, vector<16x128xf32>
      %c0_8 = arith.constant 0 : index
      %c0_9 = arith.constant 0 : index
      %26 = vector.load %arg7[%c0_8, %c0_9] : memref<16x128xf32, #tpu.memory_space<vmem>>, vector<16x128xf32>
      tpu.vector_store %arg7[%c0_8, %c0_9], %25 {strides = array<i32>} : memref<16x128xf32, #tpu.memory_space<vmem>>, vector<16x128xf32>,
    } else {
    }
    return
  }
  func.func @transform_0(%arg0: i32, %arg1: i32, %arg2: memref<1xi32, #tpu.memory_space<smem>>) -> (i32, i32) {
    %c0_i32 = arith.constant 0 : i32
    %c0_i32_0 = arith.constant 0 : i32
    return %arg0, %c0_i32 : i32, i32
  }
  func.func @transform_1(%arg0: i32, %arg1: i32, %arg2: memref<1xi32, #tpu.memory_space<smem>>) -> (i32, i32) {
    %c0_i32 = arith.constant 0 : i32
    %c0_i32_0 = arith.constant 0 : i32
    return %c0_i32, %arg1 : i32, i32
  }
  func.func @transform_2(%arg0: i32, %arg1: i32, %arg2: memref<1xi32, #tpu.memory_space<smem>>) -> (i32, i32) {
    %c0_i32 = arith.constant 0 : i32
    %c0_i32_0 = arith.constant 0 : i32
    return %arg1, %c0_i32 : i32, i32
  }
  func.func @transform_3(%arg0: i32, %arg1: i32, %arg2: memref<1xi32, #tpu.memory_space<smem>>) -> (i32, i32) {
    %c0_i32 = arith.constant 0 : i32
    return %arg0, %arg1 : i32, i32
  }
  func.func @transform_4(%arg0: i32, %arg1: i32, %arg2: memref<1xi32, #tpu.memory_space<smem>>) -> (i32, i32) {
    %c0_i32 = arith.constant 0 : i32
    %c0_i32_0 = arith.constant 0 : i32
    return %arg0, %c0_i32 : i32, i32
  }
}

</mosaic_0001>

<bundles_post_ra>
// kernel: tpu_custom_call.1
= control target key start
LH: loop header
LB: loop body
LE: loop exit
PB: predicated region body
PF: predicated region fallthrough
CT: control target
= control target key end

     0   :  { %11 = vsyncpa [#allocation5], 0  ;;  %s435_s0 = inlined_call_operand.<no memory space> [shape: s32[1], index: 0, kind: input, shape index: {}]   ;;  %s436_s1 = inlined_call_operand.vmem [shape: f32[16,1], index: 1, kind: input, shape index: {}]   ;;  %s437_s2 = inlined_call_operand.vmem [shape: f32[1,128], index: 2, kind: input, shape index: {}]   ;;  %s438_s3 = inlined_call_operand.hbm [shape: bf16[128,128], index: 3, kind: input, shape index: {}]   ;;  %s439_s4 = inlined_call_operand.vmem [shape: s8[16,128], index: 4, kind: input, shape index: {}]   ;;  %s440_s5 = inlined_call_operand.hbm [shape: f32[16,128], index: 5, kind: output, shape index: {}]  }
   0x1   :  { %12 = vsyncpa [#allocation6], 0  ;;  %s370_s18 = smov [#allocation4]  }
   0x2   :  { %s22_s19 = sshll.u32 %s370_s18, 4  ;;  %s23_s19 = int_to_ptr.vmem [resolvable:$true] %s22_s19 }
   0x3   :  { %s334_s20 = scalar_lea.vmem %s23_s19, 1024  ;;  %p339_p1 = scmp.lt.s32.totalorder %s23_s19, %s23_s19 }
   0x4   :  { %p335_p0 = scmp.ne.s32.totalorder %s23_s19, %s334_s20  ;;  %p340_p2 = scmp.lt.s32.totalorder %s334_s20, %s334_s20 }
   0x6   :  { %p341_p3 = por %p340_p2, %p339_p1 }
   0x8   :  { %p342_p4 = pnand %p341_p3, %p335_p0 }
   0xa   :  { %345 = shalt.err (!%p342_p4)
}
   0xb   :  { %s371_s21 = smov 64   ;;  %s372_s22 = smov 4  }
   0xc   :  { %28 = dma.hbm_to_vmem [thread:$0]  %s438_s3, 1024, %s23_s19, [#allocation5], %s371_s21, %s371_s21, %s372_s22  }
   0xd   :  { %366 = dma.done.wait [#allocation5], 1024  }
   0xe   :  { %367 = vsyncadd [#allocation5], 4294966272  ;;  %v373_v0 = vmov 0.0   ;;  %p252_p5 = scmp.eq.s32.totalorder %s435_s0, 0 }
   0xf   :  { %41 = vst [vmem:[#allocation7] sm:$0xff] %v373_v0  ;;  %42 = vst [vmem:[#allocation7 + $0x8] sm:$0xff] %v373_v0 }
  0x10   :  { %48 = sbr.rel (%p252_p5) target bundleno = 376 (0x178), region = 29 }
  0x15   :  { %v49_v1 = vld [vmem:[%s436_s1] sm:$0xff]  ;;  %v374_v2 = vmov 0   ;;  %v375_v3 = vmov 0.0   ;;  %v305_v4 = vld [vmem:[#allocation4 + $0x38] sm:$0xff]   ;;  %v50_v5 = vld [vmem:[%s436_s1 + $0x8] sm:$0xff]  ;;  %vm376_vm0 = vmmov 0  }
  0x16   :  { %304 = vset.pattern.permute.xlu0 %v374_v2  ;;  %273 = vmatprep.subr.bf16.mxu0 %v375_v3  ;;  %v306_v6 = vld [vmem:[#allocation4 + $0x30] sm:$0xff]   ;;  %v307_v7 = vld [vmem:[#allocation4 + $0x28] sm:$0xff]   ;;  %v308_v8 = vld [vmem:[#allocation4 + $0x20] sm:$0xff]  }
  0x17   :  { %54 = vperm.xlu0 %304, %v49_v1   ;;  %274 = vmatpush3.bf16.msra.mxu0 %v305_v4  ;;  %v309_v9 = vld [vmem:[#allocation4 + $0x18] sm:$0xff]   ;;  %v310_v10 = vld [vmem:[#allocation4 + $0x10] sm:$0xff]   ;;  %v311_v11 = vld [vmem:[#allocation4 + $0x8] sm:$0xff]  }
  0x18   :  { %275 = vmatprep.subr.bf16.mxu0 %v375_v3  ;;  %289 = vmatprep.mubr.msk.bf16.mxu0 %vm376_vm0, %v375_v3  ;;  %v312_v12 = vld [vmem:[#allocation4] sm:$0xff]   ;;  %v92_v39 = vld [vmem:[#allocation7 + $0x8] sm:$0xff] }
  0x19   :  { %v74_v13 = vld [vmem:[%s439_s4] sm:$0x3]  ;;  %v75_v14 = vld [vmem:[%s439_s4 + $0x2] sm:$0x3] }
  0x1a   :  { %vm76_vm1 = vnez %v74_v13  ;;  %vm77_vm2 = vnez %v75_v14  ;;  %v253_v16 = vld [vmem:[%s437_s2] ss:$0 sm:$0xff] }
  0x1b   :  { %59 = vperm.xlu0 %304, %v50_v5   ;;  %276 = vmatpush3.bf16.msra.mxu0 %v306_v6  ;;  %v78_v15 = vsel %vm76_vm1, 16843009, %v374_v2  ;;  %v79_v19 = vsel %vm77_vm2, 16843009, %v374_v2  ;;  %v91_v35 = vld [vmem:[#allocation7] sm:$0xff] }
  0x1c   :  { %277 = vmatprep.subr.bf16.mxu0 %v375_v3  ;;  %v80_v17 = vunpack.c.0.s8 %v78_v15  ;;  %v81_v22 = vunpack.c.0.s8 %v79_v19 }
  0x1e   :  { %vm82_vm3 = vcmp.ne.s32.totalorder %v80_v17, 0  ;;  %vm83_vm4 = vcmp.ne.s32.totalorder %v81_v22, 0 }
  0x1f   :  { %278 = vmatpush3.bf16.msra.mxu0 %v307_v7 }
  0x20   :  { %279 = vmatprep.subr.bf16.mxu0 %v375_v3 }
  0x23   :  { %280 = vmatpush3.bf16.msra.mxu0 %v308_v8 }
  0x24   :  { %281 = vmatprep.subr.bf16.mxu0 %v375_v3 }
  0x27   :  { %282 = vmatpush3.bf16.msra.mxu0 %v309_v9 }
  0x28   :  { %283 = vmatprep.subr.bf16.mxu0 %v375_v3 }
  0x2b   :  { %284 = vmatpush3.bf16.msra.mxu0 %v310_v10 }
  0x2c   :  { %285 = vmatprep.subr.bf16.mxu0 %v375_v3 }
  0x2f   :  { %286 = vmatpush3.bf16.msra.mxu0 %v311_v11 }
  0x30   :  { %287 = vmatprep.subr.bf16.mxu0 %v375_v3 }
  0x33   :  { %288 = vmatpush3.bf16.msra.mxu0 %v312_v12 }
  0x92   :  { %v55_v18 = vpop.permute.xlu0 %54 }
  0x93   :  { %v68_v20 = vadd.f32 %v253_v16, %v55_v18 }
  0x95   :  { %v70_v21 = vmul.f32 0.2, %v68_v20 }
  0x96   :  { %v60_v23 = vpop.permute.xlu0 %59 }
  0x97   :  { %v72_v24 = vmin.f32 %v68_v20, %v70_v21  ;;  %v69_v25 = vadd.f32 %v253_v16, %v60_v23 }
  0x99   :  { %v84_v26 = vsel %vm82_vm3, %v72_v24, -1e+09  ;;  %v71_v27 = vmul.f32 0.2, %v69_v25 }
  0x9a   :  { %v86_v28 = vmul.f32 1.442695, %v84_v26 }
  0x9b   :  { %v73_v29 = vmin.f32 %v69_v25, %v71_v27 }
  0x9c   :  { %313 = vpow2.f32 %v86_v28 }
  0x9d   :  { %v85_v30 = vsel %vm83_vm4, %v73_v29, -1e+09 }
  0x9e   :  { %v88_v31 = vmul.f32 1.442695, %v85_v30 }
  0xa0   :  { %315 = vpow2.f32 %v88_v31 }
  0xa9   :  { %v314_v32 = vpop.eup %313 }
  0xad   :  { %v316_v33 = vpop.eup %315 }
  0xae   :  { %v90_v34 = vpack.c.bf16 %v316_v33, %v314_v32 }
  0xb0   :  { %290 = vmatmul.mubr.bf16.vlgmr.msra.gmra.mxu0 %v90_v34 }
 0x170   :  { %v191_v36 = vpop.f32.mrf.mxu0 }
 0x171   :  { %v198_v37 = vadd.f32 %v191_v36, %v91_v35 }
 0x172   :  { %v291_v38 = vpop.f32.mrf.mxu0 }
 0x173   :  { %200 = vst [vmem:[#allocation7] sm:$0xff] %v198_v37 }
 0x174   :  { %v194_v40 = vpop.f32.mrf.mxu0 }
 0x175   :  { %v199_v41 = vadd.f32 %v194_v40, %v92_v39 }
 0x176   :  { %v292_v42 = vpop.f32.mrf.mxu0 }
 0x177   :  { %201 = vst [vmem:[#allocation7 + $0x8] sm:$0xff] %v199_v41 }
 0x178 PF:  { %v377_v45 = vmov 16   ;;  %s378_s2 = smov [#allocation7]  }
 0x179   :  { %317 = vset.pattern.permute.xlu0 %v377_v45  ;;  %s240_s4 = sshll.u32 %s378_s2, 4  ;;  %s241_s4 = int_to_ptr.vmem [resolvable:$true] %s240_s4 }
 0x17a   :  { %v205_v43 = vld [vmem:[#allocation7] sm:$0xff]  ;;  %s346_s9 = scalar_lea.vmem %s241_s4, 256  ;;  %p351_p7 = scmp.lt.s32.totalorder %s241_s4, %s241_s4 }
 0x17b   :  { %v207_v46 = vadd.f32 1e-08, %v205_v43  ;;  %p347_p6 = scmp.ne.s32.totalorder %s241_s4, %s346_s9  ;;  %p352_p8 = scmp.lt.s32.totalorder %s346_s9, %s346_s9 }
 0x17d   :  { %318 = vrcp.f32 %v207_v46  ;;  %p353_p9 = por %p352_p8, %p351_p7 }
 0x17e   :  { %v206_v44 = vld [vmem:[#allocation7 + $0x8] sm:$0xff] }
 0x17f   :  { %v208_v47 = vadd.f32 1e-08, %v206_v44  ;;  %p354_p10 = pnand %p353_p9, %p347_p6 }
 0x181   :  { %320 = vrcp.f32 %v208_v47 }
 0x18a   :  { %v319_v48 = vpop.eup %318 }
 0x18b   :  { %213 = vperm.xlu0 %317, %v319_v48  }
 0x18e   :  { %v321_v49 = vpop.eup %320 }
 0x18f   :  { %218 = vperm.xlu0 %317, %v321_v49  }
 0x206   :  { %v214_v50 = vpop.permute.xlu0 %213 }
 0x207   :  { %v221_v51 = vmul.f32 %v214_v50, %v205_v43 }
 0x209   :  { %v225_v52 = vmul.f32 1.442695, %v221_v51  ;;  %vm223_vm5 = vcmp.gt.f32.partialorder %v221_v51, 0.0 }
 0x20a   :  { %v219_v53 = vpop.permute.xlu0 %218 }
 0x20b   :  { %322 = vpow2.f32 %v225_v52  ;;  %v222_v54 = vmul.f32 %v219_v53, %v206_v44 }
 0x20d   :  { %v227_v55 = vmul.f32 1.442695, %v222_v54  ;;  %vm224_vm6 = vcmp.gt.f32.partialorder %v222_v54, 0.0 }
 0x20f   :  { %324 = vpow2.f32 %v227_v55 }
 0x218   :  { %v323_v56 = vpop.eup %322 }
 0x219   :  { %v262_v57 = vadd.f32 -1.0, %v323_v56 }
 0x21b   :  { %v231_v58 = vsel %vm223_vm5, %v221_v51, %v262_v57 }
 0x21c   :  { %v325_v59 = vpop.eup %324  ;;  %233 = vst [vmem:[#allocation7] sm:$0xff] %v231_v58 }
 0x21d   :  { %v263_v60 = vadd.f32 -1.0, %v325_v59 }
 0x21f   :  { %v232_v61 = vsel %vm224_vm6, %v222_v54, %v263_v60 }
 0x220   :  { %234 = vst [vmem:[#allocation7 + $0x8] sm:$0xff] %v232_v61 }
 0x221   :  { %357 = shalt.err (!%p354_p10)
}
 0x222   :  { %s379_s10 = smov 128   ;;  %s380_s11 = smov 8  }
 0x223   :  { %246 = dma.vmem_to_hbm [thread:$0]  %s241_s4, 256, %s440_s5, [#allocation6], %s379_s10, %s379_s10, %s380_s11  }
 0x224   :  { %368 = dma.done.wait [#allocation6], 256  }
 0x225   :  { %369 = vsyncadd [#allocation6], 4294967040 }
 0x226   :  { %250 = vsyncpa [#allocation5], 1 }
 0x227   :  { %251 = vsyncpa [#allocation6], 1 }

</bundles_post_ra>
